<compile_context>
chip_gen: v7x
topology: tpu7x:2x2x1
jax: 0.10.0
libtpu: 0.0.40
codegen_flags: <defaults>
</compile_context>

<pallas_src>
import jax
import jax.numpy as jnp
from jax import lax
from jax.experimental import pallas as pl
from jax.experimental.pallas import tpu as pltpu

LANES = 128
IN_DIM = 4

# Row offsets of each layer's real weight rows inside the packed slab.
ROW_W1 = 0     # linear1:        rows 0:4    (in=4,  outputs in cols 0:25) — VPU path
ROW_W2 = 8     # linear2:        rows 8:33   (in=25, outputs in cols 0:50)
ROW_WC = 40    # critic_linear1: rows 42:67  (in=25, output in col 2; rows 40:42 zero)
ROW_WH = 72    # fused head:     rows 72:122 (actor cols 0:2, linear3 cols 2:27)
SLAB_ROWS = ROW_WH + LANES  # 200 rows -> every 128-row MXU window stays in bounds

# Bias slab rows.
BROW_1, BROW_2, BROW_H, BROW_C = 0, 1, 2, 3


def _actor_critic_kernel(x_ref, w_ref, b_ref, out_ref):
    x = x_ref[...]                      # (TM, 4) f32
    b = b_ref[...]                      # (8, 128) f32 packed biases
    w1 = w_ref[ROW_W1:ROW_W1 + 8, :]    # aligned (8,128) load; rows 0:4 = linear1

    # F.normalize(x, dim=0): scale = rsqrt(max(||x||^2, 1e-24)).
    # Sum of squares over the 4 real lanes only — pure VPU, no cross-lane reduce.
    x0, x1, x2, x3 = x[:, 0:1], x[:, 1:2], x[:, 2:3], x[:, 3:4]
    ss = x0 * x0 + x1 * x1 + x2 * x2 + x3 * x3
    inv = lax.rsqrt(jnp.maximum(ss, jnp.float32(1e-24)))

    # linear1 (4 -> 25) as four rank-1 VPU FMAs; normalization folded into the
    # per-column scales.  Keeps the serial MXU chain at 3 matmuls and lets x stay
    # (TM, 4).  Weight-row lanes >= 25 are zero so y lanes >= 25 stay exactly 0.
    y = (x0 * inv) * w1[0:1, :]
    y = y + (x1 * inv) * w1[1:2, :]
    y = y + (x2 * inv) * w1[2:3, :]
    y = y + (x3 * inv) * w1[3:4, :]
    y = jnp.maximum(y + b[BROW_1:BROW_1 + 1, :], 0.0)          # lanes >= 25 exactly 0

    # linear2 (25 -> 50)
    y = jnp.dot(y, w_ref[ROW_W2:ROW_W2 + LANES, :], preferred_element_type=jnp.float32)
    y = jnp.maximum(y + b[BROW_2:BROW_2 + 1, :], 0.0)          # lanes >= 50 exactly 0

    # Fused head: lanes [0,2) = actor logits, lanes [2,27) = linear3 pre-activation.
    h = jnp.dot(y, w_ref[ROW_WH:ROW_WH + LANES, :], preferred_element_type=jnp.float32)
    h = h + b[BROW_H:BROW_H + 1, :]                            # lanes >= 27 exactly 0

    # critic = tanh(critic_linear1(relu(linear3 part))).  relu(h) lanes 0:2 (the
    # relu'd logits) hit zero slab rows 40:42, so no masking is needed; the real
    # critic value lands in lane 2, all other lanes stay exactly 0.
    c = jnp.maximum(h, 0.0)
    v = jnp.dot(c, w_ref[ROW_WC:ROW_WC + LANES, :], preferred_element_type=jnp.float32)
    critic = jnp.tanh(v + b[BROW_C:BROW_C + 1, :])

    # actor: 2-logit pairwise log-softmax.  With d = l0 - l1:
    #   logp0 = -softplus(-d) = d - softplus(d),   logp1 = -softplus(d)
    # Numerically stable softplus; exp argument is always <= 0 (no overflow).
    l0, l1 = h[:, 0:1], h[:, 1:2]
    d = l0 - l1
    sp = jnp.maximum(d, 0.0) + jnp.log(1.0 + jnp.exp(-jnp.abs(d)))
    logp0 = d - sp
    logp1 = -sp

    # Packed lane-dense output: lane 0/1 = log-probs, lane 2 = critic value, rest 0.
    lane = lax.broadcasted_iota(jnp.int32, critic.shape, dimension=1)
    out_ref[...] = jnp.where(lane == 0, logp0,
                             jnp.where(lane == 1, logp1, critic))


def init_params(key):
    """Deterministic init mirroring nn.Linear: U(-1/sqrt(fan_in), 1/sqrt(fan_in)).
    Weights stored as (in_features, out_features) so the forward is x @ W + b."""
    dims = {
        "linear1": (4, 25),
        "linear2": (25, 50),
        "actor_linear1": (50, 2),
        "linear3": (50, 25),
        "critic_linear1": (25, 1),
    }
    params = {}
    keys = jax.random.split(key, 2 * len(dims))
    for i, (name, (fan_in, fan_out)) in enumerate(dims.items()):
        bound = 1.0 / jnp.sqrt(jnp.float32(fan_in))
        w = jax.random.uniform(keys[2 * i], (fan_in, fan_out), jnp.float32, -bound, bound)
        bias = jax.random.uniform(keys[2 * i + 1], (fan_out,), jnp.float32, -bound, bound)
        params[name] = (w, bias)
    return params


def pack_params(params):
    """Pack all layers into one weight slab + one bias slab (once, off the hot path)."""
    w1, b1 = params["linear1"]          # (4, 25)
    w2, b2 = params["linear2"]          # (25, 50)
    wa, ba = params["actor_linear1"]    # (50, 2)
    w3, b3 = params["linear3"]          # (50, 25)
    wc, bc = params["critic_linear1"]   # (25, 1)

    w = jnp.zeros((SLAB_ROWS, LANES), jnp.float32)
    w = w.at[ROW_W1:ROW_W1 + 4, 0:25].set(w1)
    w = w.at[ROW_W2:ROW_W2 + 25, 0:50].set(w2)
    w = w.at[ROW_WH:ROW_WH + 50, 0:2].set(wa)        # fused head: actor logits cols 0:2
    w = w.at[ROW_WH:ROW_WH + 50, 2:27].set(w3)       # fused head: linear3 cols 2:27
    w = w.at[ROW_WC + 2:ROW_WC + 27, 2:3].set(wc)    # rows shifted +2 to match head lanes

    b = jnp.zeros((8, LANES), jnp.float32)
    b = b.at[BROW_1, 0:25].set(b1)
    b = b.at[BROW_2, 0:50].set(b2)
    b = b.at[BROW_H, 0:2].set(ba)
    b = b.at[BROW_H, 2:27].set(b3)
    b = b.at[BROW_C, 2:3].set(bc)
    return jax.device_put(w), jax.device_put(b)


def _round_up(n, m):
    return -(-n // m) * m


def _choose_tiling(batch):
    """(b_pad, tm).  Single step for tiny RL batches; otherwise the largest tile
    <= 512 rows that still gives >= 2 grid steps, so the "parallel" grid axis both
    amortizes per-step overhead and can split across v7x's two TensorCores."""
    if batch <= 64:
        tm = max(8, _round_up(batch, 8))
        return tm, tm
    b8 = _round_up(batch, 8)
    steps = max(2, -(-b8 // 512))
    tm = _round_up(-(-b8 // steps), 8)
    b_pad = _round_up(b8, tm)
    return b_pad, tm


@jax.jit
def _forward_padded(x2d, w_slab, b_slab):
    batch = x2d.shape[0]
    b_pad, tm = _choose_tiling(batch)
    if b_pad == batch:
        x_in = x2d
    else:
        x_in = jnp.zeros((b_pad, IN_DIM), jnp.float32).at[:batch, :].set(x2d)

    out = pl.pallas_call(
        _actor_critic_kernel,
        out_shape=jax.ShapeDtypeStruct((b_pad, LANES), jnp.float32),
        grid=(b_pad // tm,),
        in_specs=[
            pl.BlockSpec((tm, IN_DIM), lambda i: (i, 0)),        # x stays 4 lanes wide
            pl.BlockSpec((SLAB_ROWS, LANES), lambda i: (0, 0)),  # resident weight slab
            pl.BlockSpec((8, LANES), lambda i: (0, 0)),          # resident bias slab
        ],
        out_specs=pl.BlockSpec((tm, LANES), lambda i: (i, 0)),
        compiler_params=pltpu.CompilerParams(dimension_semantics=("parallel",)),
    )(x_in, w_slab, b_slab)

    # TODO(synk): on v5e, sweep a narrower (b_pad, 8) output (masked stores vs ~16x
    # less HBM writeback); lane-dense 128 kept here as the known-good layout.
    return out[:batch, 0:2], out[:batch, 2:3]


def actor_critic_forward(x, packed):
    """x: (4,) single state -> ((2,), (1,)); or (B, 4) batch -> ((B,2), (B,1)),
    applying the original module's per-sample semantics independently to each row."""
    w_slab, b_slab = packed
    x = jnp.asarray(x, jnp.float32)
    single = x.ndim == 1
    x2d = x[None, :] if single else x
    actor, critic = _forward_padded(x2d, w_slab, b_slab)
    if single:
        return actor[0], critic[0]
    return actor, critic


def _reference_forward(x, params):
    """Pure-JAX reference replicating the PyTorch forward exactly (single (4,) state)."""
    w1, b1 = params["linear1"]
    w2, b2 = params["linear2"]
    wa, ba = params["actor_linear1"]
    w3, b3 = params["linear3"]
    wc, bc = params["critic_linear1"]
    xn = x / jnp.maximum(jnp.linalg.norm(x), 1e-12)
    y = jax.nn.relu(xn @ w1 + b1)
    y = jax.nn.relu(y @ w2 + b2)
    actor = jax.nn.log_softmax(y @ wa + ba, axis=0)
    c = jax.nn.relu(y @ w3 + b3)
    critic = jnp.tanh(c @ wc + bc)
    return actor, critic


if __name__ == "__main__":
    key = jax.random.PRNGKey(0)
    pkey, xkey, xlkey = jax.random.split(key, 3)
    params = init_params(pkey)
    packed = pack_params(params)

    ATOL, RTOL = 1e-4, 1e-4

    # Small batch of CartPole-like 4-dim states (single grid step).
    xb = jax.random.normal(xkey, (8, 4), jnp.float32)
    actor_b, critic_b = actor_critic_forward(xb, packed)
    jax.block_until_ready((actor_b, critic_b))
    ref_a, ref_c = jax.vmap(lambda xi: _reference_forward(xi, params))(xb)
    assert actor_b.shape == (8, 2) and critic_b.shape == (8, 1)
    assert jnp.allclose(actor_b, ref_a, atol=ATOL, rtol=RTOL)
    assert jnp.allclose(critic_b, ref_c, atol=ATOL, rtol=RTOL)

    # Larger batch: exercises the multi-tile grid (>= 2 "parallel" steps) and row padding.
    xl = jax.random.normal(xlkey, (200, 4), jnp.float32)
    actor_l, critic_l = actor_critic_forward(xl, packed)
    jax.block_until_ready((actor_l, critic_l))
    ref_al, ref_cl = jax.vmap(lambda xi: _reference_forward(xi, params))(xl)
    assert actor_l.shape == (200, 2) and critic_l.shape == (200, 1)
    assert jnp.allclose(actor_l, ref_al, atol=ATOL, rtol=RTOL)
    assert jnp.allclose(critic_l, ref_cl, atol=ATOL, rtol=RTOL)

    # Single unbatched state — exactly the original module's call signature.
    a1, c1 = actor_critic_forward(xb[0], packed)
    jax.block_until_ready((a1, c1))
    r_a1, r_c1 = _reference_forward(xb[0], params)
    assert a1.shape == (2,) and c1.shape == (1,)
    assert jnp.allclose(a1, r_a1, atol=ATOL, rtol=RTOL)
    assert jnp.allclose(c1, r_c1, atol=ATOL, rtol=RTOL)

    print("KERNEL_OK")
</pallas_src>

<mosaic_0001>
module attributes {stable_mosaic.version = 11 : i64} {
  func.func @_actor_critic_kernel(%arg0: i32, %arg1: memref<8x4xf32, #tpu.memory_space<vmem>>, %arg2: memref<200x128xf32, #tpu.memory_space<vmem>>, %arg3: memref<8x128xf32, #tpu.memory_space<vmem>>, %arg4: memref<8x128xf32, #tpu.memory_space<vmem>>) attributes {dimension_semantics = [#tpu.dimension_semantics<parallel>], iteration_bounds = array<i64: 1>, scalar_prefetch = 0 : i64, scratch_operands = 0 : i64, tpu.core_type = #tpu.core_type<tc>, window_params = [{transform_indices = @transform_0, window_bounds = array<i64: 8, 4>}, {pipeline_mode = #tpu.pipeline_mode<synchronous>, transform_indices = @transform_1, window_bounds = array<i64: 200, 128>}, {pipeline_mode = #tpu.pipeline_mode<synchronous>, transform_indices = @transform_2, window_bounds = array<i64: 8, 128>}, {transform_indices = @transform_3, window_bounds = array<i64: 8, 128>}]} {
    %c0 = arith.constant 0 : index
    %c0_0 = arith.constant 0 : index
    %0 = vector.load %arg1[%c0, %c0_0] : memref<8x4xf32, #tpu.memory_space<vmem>>, vector<8x4xf32>
    %c0_1 = arith.constant 0 : index
    %c0_2 = arith.constant 0 : index
    %1 = vector.load %arg3[%c0_1, %c0_2] : memref<8x128xf32, #tpu.memory_space<vmem>>, vector<8x128xf32>
    %c0_3 = arith.constant 0 : index
    %c0_4 = arith.constant 0 : index
    %2 = vector.load %arg2[%c0_3, %c0_4] : memref<200x128xf32, #tpu.memory_space<vmem>>, vector<8x128xf32>
    %3 = vector.extract_strided_slice %0 {offsets = [0, 0], sizes = [8, 1], strides = [1, 1]} : vector<8x4xf32> to vector<8x1xf32>
    %4 = vector.extract_strided_slice %0 {offsets = [0, 1], sizes = [8, 1], strides = [1, 1]} : vector<8x4xf32> to vector<8x1xf32>
    %5 = vector.extract_strided_slice %0 {offsets = [0, 2], sizes = [8, 1], strides = [1, 1]} : vector<8x4xf32> to vector<8x1xf32>
    %6 = vector.extract_strided_slice %0 {offsets = [0, 3], sizes = [8, 1], strides = [1, 1]} : vector<8x4xf32> to vector<8x1xf32>
    %7 = arith.mulf %3, %3 : vector<8x1xf32>
    %8 = arith.mulf %4, %4 : vector<8x1xf32>
    %9 = arith.addf %7, %8 : vector<8x1xf32>
    %10 = arith.mulf %5, %5 : vector<8x1xf32>
    %11 = arith.addf %9, %10 : vector<8x1xf32>
    %12 = arith.mulf %6, %6 : vector<8x1xf32>
    %13 = arith.addf %11, %12 : vector<8x1xf32>
    %cst = arith.constant 1.000000e-24 : f32
    %14 = vector.broadcast %cst : f32 to vector<8x1xf32>
    %15 = arith.maximumf %13, %14 : vector<8x1xf32>
    %16 = math.rsqrt %15 : vector<8x1xf32>
    %17 = arith.mulf %3, %16 : vector<8x1xf32>
    %18 = vector.extract_strided_slice %2 {offsets = [0, 0], sizes = [1, 128], strides = [1, 1]} : vector<8x128xf32> to vector<1x128xf32>
    %19 = vector.broadcast %17 : vector<8x1xf32> to vector<8x128xf32>
    %20 = vector.broadcast %18 : vector<1x128xf32> to vector<8x128xf32>
    %21 = arith.mulf %19, %20 : vector<8x128xf32>
    %22 = arith.mulf %4, %16 : vector<8x1xf32>
    %23 = vector.extract_strided_slice %2 {offsets = [1, 0], sizes = [1, 128], strides = [1, 1]} : vector<8x128xf32> to vector<1x128xf32>
    %24 = vector.broadcast %22 : vector<8x1xf32> to vector<8x128xf32>
    %25 = vector.broadcast %23 : vector<1x128xf32> to vector<8x128xf32>
    %26 = arith.mulf %24, %25 : vector<8x128xf32>
    %27 = arith.addf %21, %26 : vector<8x128xf32>
    %28 = arith.mulf %5, %16 : vector<8x1xf32>
    %29 = vector.extract_strided_slice %2 {offsets = [2, 0], sizes = [1, 128], strides = [1, 1]} : vector<8x128xf32> to vector<1x128xf32>
    %30 = vector.broadcast %28 : vector<8x1xf32> to vector<8x128xf32>
    %31 = vector.broadcast %29 : vector<1x128xf32> to vector<8x128xf32>
    %32 = arith.mulf %30, %31 : vector<8x128xf32>
    %33 = arith.addf %27, %32 : vector<8x128xf32>
    %34 = arith.mulf %6, %16 : vector<8x1xf32>
    %35 = vector.extract_strided_slice %2 {offsets = [3, 0], sizes = [1, 128], strides = [1, 1]} : vector<8x128xf32> to vector<1x128xf32>
    %36 = vector.broadcast %34 : vector<8x1xf32> to vector<8x128xf32>
    %37 = vector.broadcast %35 : vector<1x128xf32> to vector<8x128xf32>
    %38 = arith.mulf %36, %37 : vector<8x128xf32>
    %39 = arith.addf %33, %38 : vector<8x128xf32>
    %40 = vector.extract_strided_slice %1 {offsets = [0, 0], sizes = [1, 128], strides = [1, 1]} : vector<8x128xf32> to vector<1x128xf32>
    %41 = vector.broadcast %40 : vector<1x128xf32> to vector<8x128xf32>
    %42 = arith.addf %39, %41 : vector<8x128xf32>
    %cst_5 = arith.constant 0.000000e+00 : f32
    %43 = vector.broadcast %cst_5 : f32 to vector<8x128xf32>
    %44 = arith.maximumf %42, %43 : vector<8x128xf32>
    %c8 = arith.constant 8 : index
    %c0_6 = arith.constant 0 : index
    %45 = vector.load %arg2[%c8, %c0_6] : memref<200x128xf32, #tpu.memory_space<vmem>>, vector<128x128xf32>
    %cst_7 = arith.constant dense<0.000000e+00> : vector<8x128xf32>
    %46 = tpu.matmul %44, %45, %cst_7 {dimension_numbers = #tpu.dot_dimension_numbers<[1], [0], [0], [1], [0, 0, 1, 1], [], []>} : vector<8x128xf32>, vector<128x128xf32>, vector<8x128xf32> -> vector<8x128xf32>
    %47 = vector.extract_strided_slice %1 {offsets = [1, 0], sizes = [1, 128], strides = [1, 1]} : vector<8x128xf32> to vector<1x128xf32>
    %48 = vector.broadcast %47 : vector<1x128xf32> to vector<8x128xf32>
    %49 = arith.addf %46, %48 : vector<8x128xf32>
    %cst_8 = arith.constant 0.000000e+00 : f32
    %50 = vector.broadcast %cst_8 : f32 to vector<8x128xf32>
    %51 = arith.maximumf %49, %50 : vector<8x128xf32>
    %c72 = arith.constant 72 : index
    %c0_9 = arith.constant 0 : index
    %52 = vector.load %arg2[%c72, %c0_9] : memref<200x128xf32, #tpu.memory_space<vmem>>, vector<128x128xf32>
    %cst_10 = arith.constant dense<0.000000e+00> : vector<8x128xf32>
    %53 = tpu.matmul %51, %52, %cst_10 {dimension_numbers = #tpu.dot_dimension_numbers<[1], [0], [0], [1], [0, 0, 1, 1], [], []>} : vector<8x128xf32>, vector<128x128xf32>, vector<8x128xf32> -> vector<8x128xf32>
    %54 = vector.extract_strided_slice %1 {offsets = [2, 0], sizes = [1, 128], strides = [1, 1]} : vector<8x128xf32> to vector<1x128xf32>
    %55 = vector.broadcast %54 : vector<1x128xf32> to vector<8x128xf32>
    %56 = arith.addf %53, %55 : vector<8x128xf32>
    %cst_11 = arith.constant 0.000000e+00 : f32
    %57 = vector.broadcast %cst_11 : f32 to vector<8x128xf32>
    %58 = arith.maximumf %56, %57 : vector<8x128xf32>
    %c40 = arith.constant 40 : index
    %c0_12 = arith.constant 0 : index
    %59 = vector.load %arg2[%c40, %c0_12] : memref<200x128xf32, #tpu.memory_space<vmem>>, vector<128x128xf32>
    %cst_13 = arith.constant dense<0.000000e+00> : vector<8x128xf32>
    %60 = tpu.matmul %58, %59, %cst_13 {dimension_numbers = #tpu.dot_dimension_numbers<[1], [0], [0], [1], [0, 0, 1, 1], [], []>} : vector<8x128xf32>, vector<128x128xf32>, vector<8x128xf32> -> vector<8x128xf32>
    %61 = vector.extract_strided_slice %1 {offsets = [3, 0], sizes = [1, 128], strides = [1, 1]} : vector<8x128xf32> to vector<1x128xf32>
    %62 = vector.broadcast %61 : vector<1x128xf32> to vector<8x128xf32>
    %63 = arith.addf %60, %62 : vector<8x128xf32>
    %64 = math.tanh %63 : vector<8x128xf32>
    %65 = vector.extract_strided_slice %56 {offsets = [0, 0], sizes = [8, 1], strides = [1, 1]} : vector<8x128xf32> to vector<8x1xf32>
    %66 = vector.extract_strided_slice %56 {offsets = [0, 1], sizes = [8, 1], strides = [1, 1]} : vector<8x128xf32> to vector<8x1xf32>
    %67 = arith.subf %65, %66 : vector<8x1xf32>
    %cst_14 = arith.constant 0.000000e+00 : f32
    %68 = vector.broadcast %cst_14 : f32 to vector<8x1xf32>
    %69 = arith.maximumf %67, %68 : vector<8x1xf32>
    %70 = math.absf %67 : vector<8x1xf32>
    %cst_15 = arith.constant 0.000000e+00 : f32
    %71 = vector.broadcast %cst_15 : f32 to vector<8x1xf32>
    %72 = arith.subf %71, %70 : vector<8x1xf32>
    %73 = math.exp %72 : vector<8x1xf32>
    %cst_16 = arith.constant 1.000000e+00 : f32
    %74 = vector.broadcast %cst_16 : f32 to vector<8x1xf32>
    %75 = arith.addf %74, %73 : vector<8x1xf32>
    %76 = math.log %75 : vector<8x1xf32>
    %77 = arith.addf %69, %76 : vector<8x1xf32>
    %78 = arith.subf %67, %77 : vector<8x1xf32>
    %cst_17 = arith.constant 0.000000e+00 : f32
    %79 = vector.broadcast %cst_17 : f32 to vector<8x1xf32>
    %80 = arith.subf %79, %77 : vector<8x1xf32>
    %81 = tpu.iota {dimensions = array<i32: 1>} : vector<8x128xi32>
    %c0_i32 = arith.constant 0 : i32
    %82 = vector.broadcast %c0_i32 : i32 to vector<8x128xi32>
    %83 = arith.cmpi eq, %81, %82 : vector<8x128xi32>
    %c1_i32 = arith.constant 1 : i32
    %84 = vector.broadcast %c1_i32 : i32 to vector<8x128xi32>
    %85 = arith.cmpi eq, %81, %84 : vector<8x128xi32>
    %86 = vector.shape_cast %80 : vector<8x1xf32> to vector<8x1xf32>
    %87 = vector.broadcast %86 : vector<8x1xf32> to vector<8x128xf32>
    %88 = arith.select %85, %87, %64 : vector<8x128xi1>, vector<8x128xf32>
    %89 = vector.shape_cast %78 : vector<8x1xf32> to vector<8x1xf32>
    %90 = vector.broadcast %89 : vector<8x1xf32> to vector<8x128xf32>
    %91 = arith.select %83, %90, %88 : vector<8x128xi1>, vector<8x128xf32>
    %c0_18 = arith.constant 0 : index
    %c0_19 = arith.constant 0 : index
    %92 = vector.load %arg4[%c0_18, %c0_19] : memref<8x128xf32, #tpu.memory_space<vmem>>, vector<8x128xf32>
    tpu.vector_store %arg4[%c0_18, %c0_19], %91 {strides = array<i32>} : memref<8x128xf32, #tpu.memory_space<vmem>>, vector<8x128xf32>,
    return
  }
  func.func @transform_0(%arg0: i32) -> (i32, i32) {
    %c0_i32 = arith.constant 0 : i32
    %c0_i32_0 = arith.constant 0 : i32
    return %arg0, %c0_i32 : i32, i32
  }
  func.func @transform_1(%arg0: i32) -> (i32, i32) {
    %c0_i32 = arith.constant 0 : i32
    %c0_i32_0 = arith.constant 0 : i32
    %c0_i32_1 = arith.constant 0 : i32
    return %c0_i32, %c0_i32_0 : i32, i32
  }
  func.func @transform_2(%arg0: i32) -> (i32, i32) {
    %c0_i32 = arith.constant 0 : i32
    %c0_i32_0 = arith.constant 0 : i32
    %c0_i32_1 = arith.constant 0 : i32
    return %c0_i32, %c0_i32_0 : i32, i32
  }
  func.func @transform_3(%arg0: i32) -> (i32, i32) {
    %c0_i32 = arith.constant 0 : i32
    %c0_i32_0 = arith.constant 0 : i32
    return %arg0, %c0_i32 : i32, i32
  }
}

</mosaic_0001>

<bundles_post_ra>
// kernel: _forward_padded.1
= control target key start
LH: loop header
LB: loop body
LE: loop exit
PB: predicated region body
PF: predicated region fallthrough
CT: control target
= control target key end

     0   :  { %8 = vsyncpa [#allocation3], 0  ;;  %s703_s12 = smov [#allocation2]   ;;  %s840_s0 = inlined_call_operand.vmem [shape: f32[8,4], index: 0, kind: input, shape index: {}]   ;;  %s841_s1 = inlined_call_operand.hbm [shape: f32[200,128], index: 1, kind: input, shape index: {}]   ;;  %s842_s2 = inlined_call_operand.vmem [shape: f32[8,128], index: 2, kind: input, shape index: {}]   ;;  %s843_s3 = inlined_call_operand.vmem [shape: f32[8,128], index: 3, kind: output, shape index: {}]  }
   0x1   :  { %s16_s13 = sshll.u32 %s703_s12, 4  ;;  %s679_s16 = scalar_lea.hbm %s841_s1, 3200  ;;  %s17_s13 = int_to_ptr.vmem [resolvable:$true] %s16_s13 }
   0x2   :  { %p680_p0 = scmp.ne.s32.totalorder %s841_s1, %s679_s16  ;;  %p683_p1 = scmp.lt.u32.totalorder %s679_s16, %s841_s1 }
   0x4   :  { %p685_p2 = pnand %p683_p1, %p680_p0 }
   0x6   :  { %688 = shalt.err (!%p685_p2)
}
   0x7   :  { %s689_s21 = scalar_lea.vmem %s17_s13, 3200  ;;  %p694_p4 = scmp.lt.s32.totalorder %s17_s13, %s17_s13 }
   0x8   :  { %p690_p3 = scmp.ne.s32.totalorder %s17_s13, %s689_s21  ;;  %p695_p5 = scmp.lt.s32.totalorder %s689_s21, %s689_s21 }
   0xa   :  { %p696_p6 = por %p695_p5, %p694_p4 }
   0xc   :  { %p697_p7 = pnand %p696_p6, %p690_p3 }
   0xe   :  { %700 = shalt.err (!%p697_p7)
}
   0xf   :  { %s704_s22 = smov 128   ;;  %s705_s23 = smov 8  }
  0x10   :  { %22 = dma.hbm_to_vmem [thread:$0]  %s841_s1, 3200, %s17_s13, [#allocation3], %s704_s22, %s704_s22, %s705_s23  }
  0x11   :  { %701 = dma.done.wait [#allocation3], 3200  }
  0x12   :  { %702 = vsyncadd [#allocation3], 4294964096  ;;  %v754_v0 = vld [vmem:[%s840_s0] sm:$0xff]  ;;  %s706_s28 = smov 127   ;;  %s707_s29 = smov 125   ;;  %v709_v2 = vmov 0   ;;  %v53_v56 = vlaneseq }
  0x13   :  { %v31_v1 = vmul.f32 %v754_v0, %v754_v0  ;;  %s708_s30 = smov 126   ;;  %665 = vset.pattern.permute.xlu0 %v709_v2  ;;  %v710_v10 = vmov 1   ;;  %s711_s0 = smov 2   ;;  %v110_v13 = vld [vmem:[#allocation2 + $0x8] sm:$0xff]  ;;  %v111_v14 = vld [vmem:[#allocation2 + $0x10] sm:$0xff]  ;;  %v112_v15 = vld [vmem:[#allocation2 + $0x18] sm:$0xff] }
  0x14   :  { %666 = vset.pattern.permute.xlu1 %v710_v10  ;;  %s712_s1 = smov 1   ;;  %s713_s4 = smov 3   ;;  %v714_v16 = vmov 0.0|0.0   ;;  %v578_v17 = vpack.c.bf16 %v111_v14, %v110_v13  ;;  %v113_v18 = vld [vmem:[#allocation2 + $0x20] sm:$0xff]  ;;  %v715_v20 = vmov 3   ;;  %v114_v21 = vld [vmem:[#allocation2 + $0x28] sm:$0xff] }
  0x15   :  { %33 = vrot.lane.b32.xlu0 %v31_v1, %s706_s28  ;;  %41 = vrot.lane.b32.xlu1 %v31_v1, %s707_s29  ;;  %v581_v19 = vpack.c.bf16 %v113_v18, %v112_v15  ;;  %v115_v22 = vld [vmem:[#allocation2 + $0x30] sm:$0xff]  ;;  %v116_v24 = vld [vmem:[#allocation2 + $0x38] sm:$0xff]  ;;  %v117_v25 = vld [vmem:[#allocation2 + $0x40] sm:$0xff]  ;;  %v716_v39 = vmov 2   ;;  %vm717_vm0 = vmmov 0   ;;  %v718_v46 = vmov 0.0  }
  0x16   :  { %577 = vmatprep.subr.bf16.mxu0 %v714_v16  ;;  %601 = vmatprep.subr.bf16.mxu1 %v714_v16  ;;  %v764_v23 = vpack.c.bf16 %v115_v22, %v114_v21  ;;  %v768_v26 = vpack.c.bf16 %v117_v25, %v116_v24  ;;  %v118_v28 = vld [vmem:[#allocation2 + $0x48] sm:$0xff]  ;;  %v119_v29 = vld [vmem:[#allocation2 + $0x50] sm:$0xff]  ;;  %v120_v34 = vld [vmem:[#allocation2 + $0x58] sm:$0xff]  ;;  %v808_v57 = vshrl.u32 %v53_v56, 7 }
  0x17   :  { %579 = vmatpush3.bf16.msra.mxu0 %v578_v17  ;;  %v774_v31 = vpack.c.bf16 %v119_v29, %v118_v28  ;;  %v121_v35 = vld [vmem:[#allocation2 + $0x60] sm:$0xff]  ;;  %v122_v40 = vld [vmem:[#allocation2 + $0x68] sm:$0xff]  ;;  %v123_v41 = vld [vmem:[#allocation2 + $0x70] sm:$0xff]  ;;  %504 = vmatprep.mubr.msk.f32.mxu0 %vm717_vm0, %v718_v46 }
  0x18   :  { %580 = vmatprep.subr.bf16.mxu0 %v714_v16  ;;  %v780_v37 = vpack.c.bf16 %v121_v35, %v120_v34  ;;  %v786_v42 = vpack.c.bf16 %v123_v41, %v122_v40  ;;  %v124_v43 = vld [vmem:[#allocation2 + $0x78] sm:$0xff]  ;;  %v125_v44 = vld [vmem:[#allocation2 + $0x80] sm:$0xff]  ;;  %539 = vmatprep.mubr.msk.f32.mxu1 %vm717_vm0, %v718_v46  ;;  %v209_v47 = vld [vmem:[#allocation2 + $0x88] sm:$0xff]  ;;  %v70_v58 = vsub.s32 1, %v808_v57  ;;  %v55_v59 = vsub.s32 0, %v808_v57 }
  0x19   :  { %37 = vrot.lane.b32.xlu0 %v31_v1, %s708_s30  ;;  %603 = vmatpush3.bf16.msra.mxu1 %v774_v31  ;;  %v794_v45 = vpack.c.bf16 %v125_v44, %v124_v43  ;;  %v210_v48 = vld [vmem:[#allocation2 + $0x90] sm:$0xff]  ;;  %v211_v50 = vld [vmem:[#allocation2 + $0x98] sm:$0xff]  ;;  %v212_v51 = vld [vmem:[#allocation2 + $0xa0] sm:$0xff]  ;;  %v85_v62 = vsub.s32 2, %v808_v57 }
  0x1a   :  { %604 = vmatprep.subr.bf16.mxu1 %v714_v16  ;;  %v614_v49 = vpack.c.bf16 %v210_v48, %v209_v47  ;;  %v617_v52 = vpack.c.bf16 %v212_v51, %v211_v50  ;;  %v213_v53 = vld [vmem:[#allocation2 + $0xa8] sm:$0xff]  ;;  %v214_v54 = vld [vmem:[#allocation2 + $0xb0] sm:$0xff]  ;;  %v30_v60 = vld [vmem:[#allocation2] sm:$0xff]  ;;  %v400_v48 = vand.u32 127, %v53_v56 }
  0x1b   :  { %582 = vmatpush3.bf16.msra.mxu0 %v581_v19  ;;  %v620_v55 = vpack.c.bf16 %v214_v54, %v213_v53  ;;  %v71_v61 = vrot.slane %v30_v60, %v70_v58  ;;  %v56_v63 = vrot.slane %v30_v60, %v55_v59  ;;  %v215_v19 = vld [vmem:[#allocation2 + $0xb8] sm:$0xff] }
  0x1c   :  { %583 = vmatprep.subr.bf16.mxu0 %v714_v16  ;;  %vm402_vm1 = vcmp.eq.s32.totalorder %v400_v48, 1  ;;  %vm401_vm2 = vcmp.eq.s32.totalorder %v400_v48, 0 }
  0x1d   :  { %606 = vmatpush3.bf16.msra.mxu1 %v780_v37 }
  0x1e   :  { %607 = vmatprep.subr.bf16.mxu1 %v714_v16 }
  0x1f   :  { %585 = vmatpush3.bf16.msra.mxu0 %v764_v23 }
  0x20   :  { %586 = vmatprep.subr.bf16.mxu0 %v714_v16 }
  0x21   :  { %609 = vmatpush3.bf16.msra.mxu1 %v786_v42 }
  0x22   :  { %610 = vmatprep.subr.bf16.mxu1 %v714_v16 }
  0x23   :  { %588 = vmatpush3.bf16.msra.mxu0 %v768_v26 }
  0x24   :  { %589 = vmatprep.subr.bf16.mxu0 %v714_v16 }
  0x25   :  { %612 = vmatpush3.bf16.msra.mxu1 %v794_v45 }
  0x26   :  { %613 = vmatprep.subr.bf16.mxu1 %v714_v16 }
  0x27   :  { %591 = vmatpush3.bf16.msra.mxu0 %v774_v31 }
  0x28   :  { %592 = vmatprep.subr.bf16.mxu0 %v714_v16 }
  0x29   :  { %615 = vmatpush3.bf16.msra.mxu1 %v614_v49 }
  0x2a   :  { %616 = vmatprep.subr.bf16.mxu1 %v714_v16 }
  0x2b   :  { %594 = vmatpush3.bf16.msra.mxu0 %v780_v37 }
  0x2c   :  { %595 = vmatprep.subr.bf16.mxu0 %v714_v16 }
  0x2d   :  { %618 = vmatpush3.bf16.msra.mxu1 %v617_v52 }
  0x2e   :  { %619 = vmatprep.subr.bf16.mxu1 %v714_v16 }
  0x2f   :  { %597 = vmatpush3.bf16.msra.mxu0 %v786_v42 }
  0x30   :  { %598 = vmatprep.subr.bf16.mxu0 %v714_v16 }
  0x31   :  { %621 = vmatpush3.bf16.msra.mxu1 %v620_v55 }
  0x32   :  { %622 = vmatprep.subr.bf16.mxu1 %v714_v16 }
  0x33   :  { %600 = vmatpush3.bf16.msra.mxu0 %v794_v45 }
  0x34   :  { %625 = vmatprep.subr.bf16.mxu0 %v714_v16 }
  0x87   :  { %v34_v3 = vpop.permute.xlu0 %33  ;;  %v42_v6 = vpop.permute.xlu1 %41 }
  0x88   :  { %v36_v4 = vadd.f32 %v34_v3, %v31_v1  ;;  %v100_v1 = vsub.s32 3, %v808_v57 }
  0x8b   :  { %v38_v5 = vpop.permute.xlu0 %37 }
  0x8c   :  { %v40_v7 = vadd.f32 %v38_v5, %v36_v4  ;;  %v86_v4 = vrot.slane %v30_v60, %v85_v62 }
  0x8e   :  { %v44_v8 = vadd.f32 %v42_v6, %v40_v7  ;;  %v101_v6 = vrot.slane %v30_v60, %v100_v1 }
  0x90   :  { %v45_v9 = vmax.f32 %v44_v8, 1e-24 }
  0x92   :  { %671 = vrsqrt.f32 %v45_v9  ;;  %v29_v9 = vld [vmem:[%s842_s2] sm:$0xff] }
  0x93   :  { %v107_v14 = vrot.slane %v29_v9, %v55_v59  ;;  %v129_v22 = vrot.slane %v29_v9, %v70_v58 }
  0x9c   :  { %v672_v11 = vpop.eup %671 }
  0x9d   :  { %74 = vrot.lane.b32.xlu0 %v672_v11, %s711_s0  ;;  %59 = vrot.lane.b32.xlu1 %v672_v11, %s712_s1  ;;  %v47_v12 = vmul.f32 %v672_v11, %v754_v0 }
  0xa1   :  { %89 = vrot.lane.b32.xlu1 %v672_v11, %s713_s4  ;;  %50 = vperm.xlu0 %665, %v47_v12  }
  0xa5   :  { %668 = vset.pattern.permute.xlu0 %v715_v20  ;;  %v216_v20 = vld [vmem:[#allocation2 + $0xc0] sm:$0xff] }
  0xa6   :  { %v623_v21 = vpack.c.bf16 %v216_v20, %v215_v19 }
  0xa8   :  { %624 = vmatpush3.bf16.msra.mxu1 %v623_v21 }
 0x10f   :  { %v60_v27 = vpop.permute.xlu1 %59  ;;  %v75_v32 = vpop.permute.xlu0 %74 }
 0x110   :  { %v62_v30 = vmul.f32 %v60_v27, %v754_v0  ;;  %v77_v38 = vmul.f32 %v75_v32, %v754_v0  ;;  %v220_v27 = vrot.slane %v29_v9, %v85_v62 }
 0x112   :  { %65 = vperm.xlu1 %666, %v62_v30  }
 0x113   :  { %v90_v33 = vpop.permute.xlu1 %89 }
 0x114   :  { %v92_v36 = vmul.f32 %v90_v33, %v754_v0 }
 0x116   :  { %667 = vset.pattern.permute.xlu1 %v716_v39  ;;  %95 = vperm.xlu0 %668, %v92_v36  }
 0x117   :  { %80 = vperm.xlu1 %667, %v77_v38  }
 0x11a   :  { %670 = vset.pattern.permute.xlu0 %v709_v2 }
 0x11b   :  { %669 = vset.pattern.permute.xlu1 %v709_v2 }
 0x120   :  { %v51_v2 = vpop.permute.xlu0 %50 }
 0x121   :  { %v57_v5 = vmul.f32 %v56_v63, %v51_v2 }
 0x191   :  { %v66_v0 = vpop.permute.xlu1 %65 }
 0x192   :  { %v72_v3 = vmul.f32 %v71_v61, %v66_v0 }
 0x194   :  { %v73_v10 = vadd.f32 %v72_v3, %v57_v5 }
 0x195   :  { %v96_v7 = vpop.permute.xlu0 %95 }
 0x196   :  { %v81_v8 = vpop.permute.xlu1 %80  ;;  %v102_v12 = vmul.f32 %v101_v6, %v96_v7 }
 0x197   :  { %v87_v11 = vmul.f32 %v86_v4, %v81_v8 }
 0x199   :  { %v88_v13 = vadd.f32 %v87_v11, %v73_v10 }
 0x19b   :  { %v103_v15 = vadd.f32 %v102_v12, %v88_v13 }
 0x19d   :  { %v108_v17 = vadd.f32 %v107_v14, %v103_v15 }
 0x19f   :  { %v109_v18 = vmax.f32 %v108_v17, 0.0 }
 0x1a1   :  { %505 = vmatmul.mubr.f32.vlgmr.msra.gmra.mrb[0].mxu0 %v109_v18 }
 0x1a2   :  { %627 = vmatpush3.bf16.msra.mxu0 %v764_v23  ;;  %574 = vmatprep.mubr.msk.f32.mxu0 %vm717_vm0, %v718_v46  ;;  %v311_v46 = vrot.slane %v29_v9, %v100_v1 }
 0x1a3   :  { %628 = vmatprep.subr.bf16.mxu0 %v714_v16 }
 0x1a6   :  { %630 = vmatpush3.bf16.msra.mxu0 %v768_v26 }
 0x1a7   :  { %631 = vmatprep.subr.bf16.mxu0 %v714_v16 }
 0x1aa   :  { %633 = vmatpush3.bf16.msra.mxu0 %v774_v31 }
 0x1ab   :  { %634 = vmatprep.subr.bf16.mxu0 %v714_v16 }
 0x1ae   :  { %636 = vmatpush3.bf16.msra.mxu0 %v780_v37 }
 0x1af   :  { %637 = vmatprep.subr.bf16.mxu0 %v714_v16 }
 0x1b2   :  { %639 = vmatpush3.bf16.msra.mxu0 %v786_v42 }
 0x1b3   :  { %640 = vmatprep.subr.bf16.mxu0 %v714_v16 }
 0x1b6   :  { %642 = vmatpush3.bf16.msra.mxu0 %v794_v45 }
 0x1b7   :  { %643 = vmatprep.subr.bf16.mxu0 %v714_v16 }
 0x1ba   :  { %645 = vmatpush3.bf16.msra.mxu0 %v614_v49 }
 0x1bb   :  { %646 = vmatprep.subr.bf16.mxu0 %v714_v16 }
 0x1be   :  { %648 = vmatpush3.bf16.msra.mxu0 %v617_v52 }
 0x274   :  { %v196_v23 = vpop.f32.mrb[0].mxu0 }
 0x275   :  { %v197_v24 = vadd.f32 %v196_v23, %v129_v22  ;;  %v506_v25 = vpop.f32.mrb[1].mxu0 }
 0x277   :  { %v200_v26 = vmax.f32 %v197_v24, 0.0 }
 0x279   :  { %540 = vmatmul.mubr.f32.vlgmr.msra.gmra.mrb[0].mxu1 %v200_v26 }
 0x34c   :  { %v287_v28 = vpop.f32.mrb[0].mxu1 }
 0x34d   :  { %v288_v29 = vadd.f32 %v287_v28, %v220_v27  ;;  %v541_v30 = vpop.f32.mrb[1].mxu1 }
 0x34f   :  { %v291_v31 = vmax.f32 %v288_v29, 0.0  ;;  %384 = vrot.lane.b32.xlu1 %v288_v29, %s706_s28 }
 0x351   :  { %575 = vmatmul.mubr.f32.vlgmr.msra.gmra.mrb[2].mxu0 %v291_v31 }
 0x3c1   :  { %v385_v16 = vpop.permute.xlu1 %384 }
 0x3c2   :  { %v387_v32 = vsub.f32 %v288_v29, %v385_v16 }
 0x3c4   :  { %v389_v33 = vand.u32 2147483647, %v387_v32  ;;  %v388_v39 = vmax.f32 %v387_v32, 0.0 }
 0x3c6   :  { %v390_v34 = vsub.f32 0.0, %v389_v33 }
 0x3c8   :  { %v391_v35 = vmul.f32 1.442695, %v390_v34 }
 0x3ca   :  { %673 = vpow2.f32 %v391_v35 }
 0x3d4   :  { %v674_v36 = vpop.eup %673 }
 0x3d5   :  { %v393_v37 = vadd.f32 1.0, %v674_v36 }
 0x3d7   :  { %675 = vlog2.f32 %v393_v37 }
 0x3e1   :  { %v676_v38 = vpop.eup %675 }
 0x3e2   :  { %v395_v40 = vmul.f32 0.6931472, %v676_v38 }
 0x3e4   :  { %v396_v41 = vadd.f32 %v395_v40, %v388_v39 }
 0x3e6   :  { %v398_v42 = vsub.f32 0.0, %v396_v41  ;;  %v397_v43 = vsub.f32 %v387_v32, %v396_v41 }
 0x3e8   :  { %405 = vperm.xlu1 %669, %v398_v42   ;;  %411 = vperm.xlu0 %670, %v397_v43  }
 0x424   :  { %v378_v44 = vpop.f32.mrb[2].mxu0 }
 0x425   :  { %v576_v45 = vpop.f32.mrb[3].mxu0  ;;  %v379_v47 = vadd.f32 %v378_v44, %v311_v46 }
 0x427   :  { %677 = vtanh.f32 %v379_v47 }
 0x431   :  { %v678_v49 = vpop.eup %677 }
 0x467   :  { %v406_v50 = vpop.permute.xlu1 %405  ;;  %v412_v51 = vpop.permute.xlu0 %411 }
 0x468   :  { %v408_v52 = vsel %vm402_vm1, %v406_v50, %v678_v49 }
 0x469   :  { %v414_v53 = vsel %vm401_vm2, %v412_v51, %v408_v52 }
 0x46a   :  { %415 = vst [vmem:[%s843_s3] sm:$0xff] %v414_v53 }
 0x46b   :  { %420 = vsyncpa [#allocation3], 1 }

</bundles_post_ra>
